<compile_context>
chip_gen: v6e
topology: v6e:2x2x1
jax: 0.10.0
libtpu: 0.0.40
codegen_flags: <defaults>
</compile_context>

<pallas_src>
import math
from functools import partial

import jax
import jax.numpy as jnp
from jax.experimental import pallas as pl
from jax.experimental.pallas import tpu as pltpu

# --- small version-compat shims (zero runtime cost) -------------------------
_MS = getattr(pltpu, "MemorySpace", None) or getattr(pltpu, "TPUMemorySpace", None)
_VMEM_SPACE = _MS.VMEM

if hasattr(pl, "reciprocal"):
    def _recip(x):
        return pl.reciprocal(x, approx=True)       # EUP slot, ~free
else:                                              # older JAX fallback
    def _recip(x):
        return 1.0 / x


# ---------------------------------------------------------------------------
# In-kernel helpers (only ops guaranteed to lower in Mosaic)
# ---------------------------------------------------------------------------
def _erf(z):
    # Abramowitz & Stegun 7.1.26 polynomial, |abs err| < 1.5e-7 (+ ~1e-4 from
    # the approx reciprocal, well inside the test tolerance).
    a1, a2, a3, a4, a5 = (0.254829592, -0.284496736, 1.421413741,
                          -1.453152027, 1.061405429)
    p = 0.3275911
    s = jnp.where(z < 0.0, -1.0, 1.0)
    az = jnp.abs(z)
    t = _recip(1.0 + p * az)
    poly = ((((a5 * t + a4) * t + a3) * t + a2) * t + a1) * t
    return s * (1.0 - poly * jnp.exp(-az * az))


def _gelu_exact(x):
    # torch.nn.GELU() default: 0.5*x*(1 + erf(x/sqrt(2)))
    return 0.5 * x * (1.0 + _erf(x * (1.0 / math.sqrt(2.0))))


# ---------------------------------------------------------------------------
# Fused kernel: conv1 matmul+bias+GELU -> conv2 matmul+bias -> softmax(dim=1)
# ---------------------------------------------------------------------------
def _fused_kernel(p1_ref, w1_ref, b1_ref, w2_ref, b2_ref, o_ref, aflat_ref,
                  *, n_batch, p1_rows, ck, lout, c2pad):
    # p1_ref   : (P1*N, K1p)        im2col patches (patch-major, batch-minor)
    # w1_ref   : (K1p, Ck)          conv1 weight, flattened/transposed/padded
    # b1_ref   : (1, Ck)
    # w2_ref   : (P1*Ck, Lout*c2pad) conv2 weight with cat/permute/im2col folded in
    # b2_ref   : (1, Lout*c2pad)
    # o_ref    : (N, Lout*c2pad)    softmax output, lane-dense
    # aflat_ref: (N, P1*Ck)         VMEM scratch for the activation relayout

    # conv1: ONE MXU matmul + bias + exact GELU (stays on-chip).
    a = jnp.dot(p1_ref[...], w1_ref[...], preferred_element_type=jnp.float32)
    a = _gelu_exact(a + b1_ref[...])                      # (P1*N, Ck); padded lanes stay 0

    # Relayout (P1*N, Ck) -> (N, P1*Ck) via a tiny VMEM scratch so conv2 is a
    # single matmul (P1 static slice-stores; cheap, guaranteed lowering).
    for p in range(p1_rows):
        aflat_ref[:, p * ck:(p + 1) * ck] = a[p * n_batch:(p + 1) * n_batch, :]

    # conv2 (+bias): ONE matmul with K = P1*Ck, lane-packed logits per l-group.
    y = b2_ref[...] + jnp.dot(aflat_ref[...], w2_ref[...],
                              preferred_element_type=jnp.float32)   # (N, Lout*c2pad)

    # Softmax over the Lout groups (torch Softmax(dim=1)).  The whole Lout
    # axis lives in this single block, so the reduction is global (not tiled).
    ys = [y[:, l * c2pad:(l + 1) * c2pad] for l in range(lout)]
    m = ys[0]
    for t in ys[1:]:
        m = jnp.maximum(m, t)
    es = [jnp.exp(t - m) for t in ys]
    s = es[0]
    for t in es[1:]:
        s = s + t
    inv = _recip(s)
    # Single lane-dense store of the whole output row block.
    o_ref[...] = jnp.concatenate([e * inv for e in es], axis=-1)


# ---------------------------------------------------------------------------
# One-time weight packing (hoisted out of the per-call forward path)
# ---------------------------------------------------------------------------
def pack_params(w1, b1, w2, b2, input_hw):
    f32 = jnp.float32
    H, W = input_hw
    C1, Cin, KH, KW = w1.shape
    Hout, Wout = H - KH + 1, W - KW + 1
    P1 = Hout * Wout
    K1 = Cin * KH * KW
    C2, C2in, Kc = w2.shape
    Lout = 3 * Wout - Kc + 1
    assert C2in == C1 * Hout, "requires H' == C2in / C1 (documented reinterpretation)"
    assert Lout >= 1

    K1p = ((K1 + 127) // 128) * 128       # 300 -> 384 (lane multiple)
    Ck = ((C1 + 7) // 8) * 8              # 10  -> 16
    C2pad = 128                           # lane-dense softmax groups / output
    LC = Lout * C2pad

    # conv1 weights (weight-only transforms; done once).
    w1p = jnp.pad(w1.astype(f32).reshape(C1, K1).T,
                  ((0, K1p - K1), (0, Ck - C1)))            # (K1p, Ck)
    b1p = jnp.pad(b1.astype(f32), (0, Ck - C1))[None, :]    # (1, Ck)

    # conv2 weights with the cat(x3)/permute/Conv1d-im2col folded in:
    # y[n,l,o] = b2[o] + sum_{h,w,c} GELU(conv1)[n,h,w,c] * T[h,w,c,l,o]
    # T[h,w,c,l,o] = sum_k w2[o, c*Hout+h, k] * [(l+k) mod Wout == w]
    wrap = (jnp.arange(Lout)[:, None] + jnp.arange(Kc)[None, :]) % Wout
    sel = (wrap[:, :, None] == jnp.arange(Wout)[None, None, :]).astype(f32)   # (Lout,Kc,Wout)
    w2r = w2.astype(f32).reshape(C2, C1, Hout, Kc)           # ch = c*Hout + h
    T = jnp.einsum('ochk,lkw->hwclo', w2r, sel)              # (Hout,Wout,C1,Lout,C2)
    W2E = jnp.pad(T.reshape(P1, C1, Lout, C2),
                  ((0, 0), (0, Ck - C1), (0, 0), (0, C2pad - C2)))
    w2e = W2E.reshape(P1 * Ck, LC)                           # (128, Lout*128)
    b2v = jnp.tile(jnp.pad(b2.astype(f32), (0, C2pad - C2)), Lout)[None, :]   # (1, LC)

    packed = dict(w1p=w1p, b1p=b1p, w2e=w2e, b2v=b2v)
    meta = dict(kh=KH, kw=KW, c2=C2)
    return packed, meta


# ---------------------------------------------------------------------------
# Per-call forward: im2col gather + one fused Pallas kernel
# ---------------------------------------------------------------------------
@partial(jax.jit, static_argnames=("kh", "kw", "c2"))
def model_forward(x, w1p, b1p, w2e, b2v, *, kh, kw, c2):
    f32 = jnp.float32
    x = x.astype(f32)
    N, Cin, H, W = x.shape
    K1p, Ck = w1p.shape
    Hout, Wout = H - kh + 1, W - kw + 1
    P1 = Hout * Wout
    K1 = Cin * kh * kw
    LC = w2e.shape[1]
    C2pad = 128
    Lout = LC // C2pad
    assert w2e.shape[0] == P1 * Ck

    # conv1 im2col: ONE vectorized gather; rows ordered (patch-major, batch-minor).
    hidx = (jnp.arange(Hout)[:, None] + jnp.arange(kh)[None, :])[:, None, :, None]
    widx = (jnp.arange(Wout)[:, None] + jnp.arange(kw)[None, :])[None, :, None, :]
    pat = x[:, :, hidx, widx]                                # (N,Cin,Hout,Wout,KH,KW)
    p1 = pat.transpose(2, 3, 0, 1, 4, 5).reshape(P1 * N, K1)
    p1p = jnp.pad(p1, ((0, 0), (0, K1p - K1)))               # (P1*N, K1p)

    flops = 2 * (P1 * N * K1p * Ck + N * (P1 * Ck) * LC)
    transcendentals = P1 * N * Ck + N * LC
    bytes_accessed = 4 * (p1p.size + w1p.size + b1p.size + w2e.size + b2v.size + N * LC)

    vmem_spec = pl.BlockSpec(memory_space=_VMEM_SPACE)
    # Single launch, no grid: total working set (<1 MiB) fits VMEM with huge
    # headroom on v5e/v6e/v7x.
    # TODO(synk): for large batch, add grid=(pl.cdiv(N, Nb),) with
    # dimension_semantics=("parallel",) so v7x's second TensorCore is used.
    out = pl.pallas_call(
        partial(_fused_kernel, n_batch=N, p1_rows=P1, ck=Ck,
                lout=Lout, c2pad=C2pad),
        out_shape=jax.ShapeDtypeStruct((N, LC), f32),
        in_specs=[vmem_spec, vmem_spec, vmem_spec, vmem_spec, vmem_spec],
        out_specs=vmem_spec,
        scratch_shapes=[pltpu.VMEM((N, P1 * Ck), jnp.float32)],
        cost_estimate=pl.CostEstimate(flops=flops,
                                      transcendentals=transcendentals,
                                      bytes_accessed=bytes_accessed),
    )(p1p, w1p, b1p, w2e, b2v)

    # Padded lanes (o >= C2) hold harmless 1/Lout values; slice them away.
    return out.reshape(N, Lout, C2pad)[:, :, :c2]            # (N, Lout, C2)


# ---------------------------------------------------------------------------
# Pure-JAX reference (sanity check only)
# ---------------------------------------------------------------------------
def reference(x, w1, b1, w2, b2):
    v = jax.lax.conv_general_dilated(
        x, w1, (1, 1), "VALID", dimension_numbers=("NCHW", "OIHW", "NCHW")
    ) + b1[None, :, None, None]
    v1 = jnp.transpose(v, (0, 2, 3, 1))
    res = jnp.concatenate([v1, v1, v1], axis=2)
    res = jnp.transpose(res, (0, 3, 1, 2))
    res = jax.nn.gelu(res, approximate=False)
    N, C, Hh, Ww = res.shape
    res1d = res.reshape(N, C * Hh, Ww)
    y = jax.lax.conv_general_dilated(
        res1d[:, :, None, :], w2[:, :, None, :], (1, 1), "VALID",
        dimension_numbers=("NCHW", "OIHW", "NCHW"),
    )[:, :, 0, :] + b2[None, :, None]
    y = jnp.transpose(y, (0, 2, 1))
    return jax.nn.softmax(y, axis=1)


if __name__ == "__main__":
    key = jax.random.PRNGKey(0)
    kx, k1, k2, k3, k4 = jax.random.split(key, 5)

    # Minimal input shape making the whole pipeline well defined:
    # H' = 11-10+1 = 2 (so C1*H' = 20 Conv1d channels), 3*W' = 12 >= 10.
    N, Cin, H, W = 1, 2, 11, 18
    x = jax.random.normal(kx, (N, Cin, H, W), jnp.float32)

    # conv1 = Conv2d(2, 10, (10, 15)); PyTorch-style uniform(+-1/sqrt(fan_in))
    fan1 = Cin * 10 * 15
    b1lim = 1.0 / math.sqrt(fan1)
    w1 = jax.random.uniform(k1, (10, Cin, 10, 15), jnp.float32, -b1lim, b1lim)
    b1 = jax.random.uniform(k2, (10,), jnp.float32, -b1lim, b1lim)

    # conv2 = Conv1d(20, 10, 10)
    fan2 = 20 * 10
    b2lim = 1.0 / math.sqrt(fan2)
    w2 = jax.random.uniform(k3, (10, 20, 10), jnp.float32, -b2lim, b2lim)
    b2 = jax.random.uniform(k4, (10,), jnp.float32, -b2lim, b2lim)

    # One-time weight packing (hoisted out of the per-call path).
    packed, meta = pack_params(w1, b1, w2, b2, input_hw=(H, W))
    packed = {k: jax.block_until_ready(v) for k, v in packed.items()}

    out = model_forward(x, packed["w1p"], packed["b1p"],
                        packed["w2e"], packed["b2v"], **meta)
    out = jax.block_until_ready(out)

    ref = reference(x, w1, b1, w2, b2)
    assert out.shape == (N, 3, 10), out.shape
    max_err = float(jnp.max(jnp.abs(out - ref)))
    assert jnp.allclose(out, ref, atol=2e-3, rtol=2e-3), max_err
    print("KERNEL_OK")
</pallas_src>

<mosaic_0001>
module attributes {stable_mosaic.version = 11 : i64} {
  func.func @_fused_kernel(%arg0: memref<8x384xf32, #tpu.memory_space<vmem>>, %arg1: memref<384x16xf32, #tpu.memory_space<vmem>>, %arg2: memref<1x16xf32, #tpu.memory_space<vmem>>, %arg3: memref<128x384xf32, #tpu.memory_space<vmem>>, %arg4: memref<1x384xf32, #tpu.memory_space<vmem>>, %arg5: memref<1x384xf32, #tpu.memory_space<vmem>>, %arg6: memref<1x128xf32, #tpu.memory_space<vmem>>) attributes {dimension_semantics = [], scalar_prefetch = 0 : i64, scratch_operands = 1 : i64, tpu.core_type = #tpu.core_type<tc>} {
    %c0 = arith.constant 0 : index
    %c0_0 = arith.constant 0 : index
    %0 = vector.load %arg0[%c0, %c0_0] : memref<8x384xf32, #tpu.memory_space<vmem>>, vector<8x384xf32>
    %c0_1 = arith.constant 0 : index
    %c0_2 = arith.constant 0 : index
    %1 = vector.load %arg1[%c0_1, %c0_2] : memref<384x16xf32, #tpu.memory_space<vmem>>, vector<384x16xf32>
    %cst = arith.constant dense<0.000000e+00> : vector<8x16xf32>
    %2 = tpu.matmul %0, %1, %cst {dimension_numbers = #tpu.dot_dimension_numbers<[1], [0], [0], [1], [0, 0, 1, 1], [], []>} : vector<8x384xf32>, vector<384x16xf32>, vector<8x16xf32> -> vector<8x16xf32>
    %c0_3 = arith.constant 0 : index
    %c0_4 = arith.constant 0 : index
    %3 = vector.load %arg2[%c0_3, %c0_4] : memref<1x16xf32, #tpu.memory_space<vmem>>, vector<1x16xf32>
    %4 = vector.broadcast %3 : vector<1x16xf32> to vector<8x16xf32>
    %5 = arith.addf %2, %4 : vector<8x16xf32>
    %cst_5 = arith.constant 5.000000e-01 : f32
    %6 = vector.broadcast %cst_5 : f32 to vector<8x16xf32>
    %7 = arith.mulf %6, %5 : vector<8x16xf32>
    %cst_6 = arith.constant 0.707106769 : f32
    %8 = vector.broadcast %cst_6 : f32 to vector<8x16xf32>
    %9 = arith.mulf %5, %8 : vector<8x16xf32>
    %cst_7 = arith.constant 0.000000e+00 : f32
    %10 = vector.broadcast %cst_7 : f32 to vector<8x16xf32>
    %11 = arith.cmpf olt, %9, %10 : vector<8x16xf32>
    %cst_8 = arith.constant -1.000000e+00 : f32
    %cst_9 = arith.constant 1.000000e+00 : f32
    %12 = vector.broadcast %cst_8 : f32 to vector<8x16xf32>
    %13 = vector.broadcast %cst_9 : f32 to vector<8x16xf32>
    %14 = arith.select %11, %12, %13 : vector<8x16xi1>, vector<8x16xf32>
    %15 = math.absf %9 : vector<8x16xf32>
    %cst_10 = arith.constant 0.327591091 : f32
    %16 = vector.broadcast %cst_10 : f32 to vector<8x16xf32>
    %17 = arith.mulf %16, %15 : vector<8x16xf32>
    %cst_11 = arith.constant 1.000000e+00 : f32
    %18 = vector.broadcast %cst_11 : f32 to vector<8x16xf32>
    %19 = arith.addf %18, %17 : vector<8x16xf32>
    %20 = tpu.reciprocal %19 {approx = true} : vector<8x16xf32> -> vector<8x16xf32>
    %cst_12 = arith.constant 1.06140542 : f32
    %21 = vector.broadcast %cst_12 : f32 to vector<8x16xf32>
    %22 = arith.mulf %21, %20 : vector<8x16xf32>
    %cst_13 = arith.constant -1.45315206 : f32
    %23 = vector.broadcast %cst_13 : f32 to vector<8x16xf32>
    %24 = arith.addf %22, %23 : vector<8x16xf32>
    %25 = arith.mulf %24, %20 : vector<8x16xf32>
    %cst_14 = arith.constant 1.42141378 : f32
    %26 = vector.broadcast %cst_14 : f32 to vector<8x16xf32>
    %27 = arith.addf %25, %26 : vector<8x16xf32>
    %28 = arith.mulf %27, %20 : vector<8x16xf32>
    %cst_15 = arith.constant -0.284496725 : f32
    %29 = vector.broadcast %cst_15 : f32 to vector<8x16xf32>
    %30 = arith.addf %28, %29 : vector<8x16xf32>
    %31 = arith.mulf %30, %20 : vector<8x16xf32>
    %cst_16 = arith.constant 0.254829586 : f32
    %32 = vector.broadcast %cst_16 : f32 to vector<8x16xf32>
    %33 = arith.addf %31, %32 : vector<8x16xf32>
    %34 = arith.mulf %33, %20 : vector<8x16xf32>
    %cst_17 = arith.constant 0.000000e+00 : f32
    %35 = vector.broadcast %cst_17 : f32 to vector<8x16xf32>
    %36 = arith.subf %35, %15 : vector<8x16xf32>
    %37 = arith.mulf %36, %15 : vector<8x16xf32>
    %38 = math.exp %37 : vector<8x16xf32>
    %39 = arith.mulf %34, %38 : vector<8x16xf32>
    %cst_18 = arith.constant 1.000000e+00 : f32
    %40 = vector.broadcast %cst_18 : f32 to vector<8x16xf32>
    %41 = arith.subf %40, %39 : vector<8x16xf32>
    %42 = arith.mulf %14, %41 : vector<8x16xf32>
    %cst_19 = arith.constant 1.000000e+00 : f32
    %43 = vector.broadcast %cst_19 : f32 to vector<8x16xf32>
    %44 = arith.addf %43, %42 : vector<8x16xf32>
    %45 = arith.mulf %7, %44 : vector<8x16xf32>
    %46 = vector.extract_strided_slice %45 {offsets = [0, 0], sizes = [1, 16], strides = [1, 1]} : vector<8x16xf32> to vector<1x16xf32>
    %c0_20 = arith.constant 0 : index
    %c0_21 = arith.constant 0 : index
    %47 = vector.load %arg6[%c0_20, %c0_21] : memref<1x128xf32, #tpu.memory_space<vmem>>, vector<1x16xf32>
    tpu.vector_store %arg6[%c0_20, %c0_21], %46 {strides = array<i32>} : memref<1x128xf32, #tpu.memory_space<vmem>>, vector<1x16xf32>,
    %48 = vector.extract_strided_slice %45 {offsets = [1, 0], sizes = [1, 16], strides = [1, 1]} : vector<8x16xf32> to vector<1x16xf32>
    %c0_22 = arith.constant 0 : index
    %c16 = arith.constant 16 : index
    %49 = vector.load %arg6[%c0_22, %c16] : memref<1x128xf32, #tpu.memory_space<vmem>>, vector<1x16xf32>
    tpu.vector_store %arg6[%c0_22, %c16], %48 {strides = array<i32>} : memref<1x128xf32, #tpu.memory_space<vmem>>, vector<1x16xf32>,
    %50 = vector.extract_strided_slice %45 {offsets = [2, 0], sizes = [1, 16], strides = [1, 1]} : vector<8x16xf32> to vector<1x16xf32>
    %c0_23 = arith.constant 0 : index
    %c32 = arith.constant 32 : index
    %51 = vector.load %arg6[%c0_23, %c32] : memref<1x128xf32, #tpu.memory_space<vmem>>, vector<1x16xf32>
    tpu.vector_store %arg6[%c0_23, %c32], %50 {strides = array<i32>} : memref<1x128xf32, #tpu.memory_space<vmem>>, vector<1x16xf32>,
    %52 = vector.extract_strided_slice %45 {offsets = [3, 0], sizes = [1, 16], strides = [1, 1]} : vector<8x16xf32> to vector<1x16xf32>
    %c0_24 = arith.constant 0 : index
    %c48 = arith.constant 48 : index
    %53 = vector.load %arg6[%c0_24, %c48] : memref<1x128xf32, #tpu.memory_space<vmem>>, vector<1x16xf32>
    tpu.vector_store %arg6[%c0_24, %c48], %52 {strides = array<i32>} : memref<1x128xf32, #tpu.memory_space<vmem>>, vector<1x16xf32>,
    %54 = vector.extract_strided_slice %45 {offsets = [4, 0], sizes = [1, 16], strides = [1, 1]} : vector<8x16xf32> to vector<1x16xf32>
    %c0_25 = arith.constant 0 : index
    %c64 = arith.constant 64 : index
    %55 = vector.load %arg6[%c0_25, %c64] : memref<1x128xf32, #tpu.memory_space<vmem>>, vector<1x16xf32>
    tpu.vector_store %arg6[%c0_25, %c64], %54 {strides = array<i32>} : memref<1x128xf32, #tpu.memory_space<vmem>>, vector<1x16xf32>,
    %56 = vector.extract_strided_slice %45 {offsets = [5, 0], sizes = [1, 16], strides = [1, 1]} : vector<8x16xf32> to vector<1x16xf32>
    %c0_26 = arith.constant 0 : index
    %c80 = arith.constant 80 : index
    %57 = vector.load %arg6[%c0_26, %c80] : memref<1x128xf32, #tpu.memory_space<vmem>>, vector<1x16xf32>
    tpu.vector_store %arg6[%c0_26, %c80], %56 {strides = array<i32>} : memref<1x128xf32, #tpu.memory_space<vmem>>, vector<1x16xf32>,
    %58 = vector.extract_strided_slice %45 {offsets = [6, 0], sizes = [1, 16], strides = [1, 1]} : vector<8x16xf32> to vector<1x16xf32>
    %c0_27 = arith.constant 0 : index
    %c96 = arith.constant 96 : index
    %59 = vector.load %arg6[%c0_27, %c96] : memref<1x128xf32, #tpu.memory_space<vmem>>, vector<1x16xf32>
    tpu.vector_store %arg6[%c0_27, %c96], %58 {strides = array<i32>} : memref<1x128xf32, #tpu.memory_space<vmem>>, vector<1x16xf32>,
    %60 = vector.extract_strided_slice %45 {offsets = [7, 0], sizes = [1, 16], strides = [1, 1]} : vector<8x16xf32> to vector<1x16xf32>
    %c0_28 = arith.constant 0 : index
    %c112 = arith.constant 112 : index
    %61 = vector.load %arg6[%c0_28, %c112] : memref<1x128xf32, #tpu.memory_space<vmem>>, vector<1x16xf32>
    tpu.vector_store %arg6[%c0_28, %c112], %60 {strides = array<i32>} : memref<1x128xf32, #tpu.memory_space<vmem>>, vector<1x16xf32>,
    %c0_29 = arith.constant 0 : index
    %c0_30 = arith.constant 0 : index
    %62 = vector.load %arg4[%c0_29, %c0_30] : memref<1x384xf32, #tpu.memory_space<vmem>>, vector<1x384xf32>
    %c0_31 = arith.constant 0 : index
    %c0_32 = arith.constant 0 : index
    %63 = vector.load %arg6[%c0_31, %c0_32] : memref<1x128xf32, #tpu.memory_space<vmem>>, vector<1x128xf32>
    %c0_33 = arith.constant 0 : index
    %c0_34 = arith.constant 0 : index
    %64 = vector.load %arg3[%c0_33, %c0_34] : memref<128x384xf32, #tpu.memory_space<vmem>>, vector<128x384xf32>
    %cst_35 = arith.constant dense<0.000000e+00> : vector<1x384xf32>
    %65 = tpu.matmul %63, %64, %cst_35 {dimension_numbers = #tpu.dot_dimension_numbers<[1], [0], [0], [1], [0, 0, 1, 1], [], []>} : vector<1x128xf32>, vector<128x384xf32>, vector<1x384xf32> -> vector<1x384xf32>
    %66 = arith.addf %62, %65 : vector<1x384xf32>
    %67 = vector.extract_strided_slice %66 {offsets = [0, 0], sizes = [1, 128], strides = [1, 1]} : vector<1x384xf32> to vector<1x128xf32>
    %68 = vector.extract_strided_slice %66 {offsets = [0, 128], sizes = [1, 128], strides = [1, 1]} : vector<1x384xf32> to vector<1x128xf32>
    %69 = vector.extract_strided_slice %66 {offsets = [0, 256], sizes = [1, 128], strides = [1, 1]} : vector<1x384xf32> to vector<1x128xf32>
    %70 = arith.maximumf %67, %68 : vector<1x128xf32>
    %71 = arith.maximumf %70, %69 : vector<1x128xf32>
    %72 = arith.subf %67, %71 : vector<1x128xf32>
    %73 = math.exp %72 : vector<1x128xf32>
    %74 = arith.subf %68, %71 : vector<1x128xf32>
    %75 = math.exp %74 : vector<1x128xf32>
    %76 = arith.subf %69, %71 : vector<1x128xf32>
    %77 = math.exp %76 : vector<1x128xf32>
    %78 = arith.addf %73, %75 : vector<1x128xf32>
    %79 = arith.addf %78, %77 : vector<1x128xf32>
    %80 = tpu.reciprocal %79 {approx = true} : vector<1x128xf32> -> vector<1x128xf32>
    %81 = arith.mulf %73, %80 : vector<1x128xf32>
    %82 = arith.mulf %75, %80 : vector<1x128xf32>
    %83 = arith.mulf %77, %80 : vector<1x128xf32>
    %84 = tpu.concatenate %81, %82, %83 in 1 : vector<1x128xf32>, vector<1x128xf32>, vector<1x128xf32> -> vector<1x384xf32>
    %c0_36 = arith.constant 0 : index
    %c0_37 = arith.constant 0 : index
    %85 = vector.load %arg5[%c0_36, %c0_37] : memref<1x384xf32, #tpu.memory_space<vmem>>, vector<1x384xf32>
    tpu.vector_store %arg5[%c0_36, %c0_37], %84 {strides = array<i32>} : memref<1x384xf32, #tpu.memory_space<vmem>>, vector<1x384xf32>,
    return
  }
}

</mosaic_0001>

<bundles_post_ra>
// kernel: model_forward.1
= control target key start
LH: loop header
LB: loop body
LE: loop exit
PB: predicated region body
PF: predicated region fallthrough
CT: control target
= control target key end

     0   :  { %v722_v3 = vmov 0.0   ;;  %vm723_vm0 = vmmov 0   ;;  %vm244_vm2 = vcmask 122880   ;;  %s725_s19 = smov 48   ;;  %s726_s20 = smov 16   ;;  %vm250_vm3 = vcmask 255105   ;;  %s1108_s1 = inlined_call_operand.vmem [shape: f32[384,16], index: 1, kind: input, shape index: {}]   ;;  %s1109_s0 = inlined_call_operand.vmem [shape: f32[8,384], index: 0, kind: input, shape index: {}]   ;;  %s1110_s3 = inlined_call_operand.vmem [shape: f32[128,384], index: 3, kind: input, shape index: {}]   ;;  %s1111_s2 = inlined_call_operand.vmem [shape: f32[1,16], index: 2, kind: input, shape index: {}]   ;;  %s1112_s4 = inlined_call_operand.vmem [shape: f32[1,384], index: 4, kind: input, shape index: {}]   ;;  %s1113_s5 = inlined_call_operand.vmem [shape: f32[1,384], index: 5, kind: output, shape index: {}]  }
   0x1   :  { %v54_v0 = vld [vmem:[%s1108_s1 + $0xf8] sm:$0xff]  ;;  %v53_v2 = vld [vmem:[%s1108_s1 + $0xf0] sm:$0xff]  ;;  %629 = vmatprep.subr.mxu1 %v722_v3  ;;  %661 = vmatprep.mubr.msk.f32.mxu1 %vm723_vm0, %v722_v3  ;;  %v52_v5 = vld [vmem:[%s1108_s1 + $0xe8] sm:$0xff]  ;;  %s728_s29 = smov 32   ;;  %s729_s11 = smov 96   ;;  %vm255_vm4 = vcmask 387330  }
   0x2   :  { %v38_v1 = vld [vmem:[%s1108_s1 + $0x78] sm:$0xff]  ;;  %560 = vmatprep.subr.mxu0 %v54_v0  ;;  %v37_v4 = vld [vmem:[%s1108_s1 + $0x70] sm:$0xff]  ;;  %v36_v7 = vld [vmem:[%s1108_s1 + $0x68] sm:$0xff]  ;;  %s730_s12 = smov 80   ;;  %s731_s13 = smov 112   ;;  %vm260_vm5 = vcmask 519555  }
   0x3   :  { %561 = vmatpush3.msra.mxu0 %v38_v1  ;;  %v70_v6 = vld [vmem:[%s1108_s1 + $0x178] sm:$0xff]  ;;  %v69_v8 = vld [vmem:[%s1108_s1 + $0x170] sm:$0xff]  ;;  %v51_v9 = vld [vmem:[%s1108_s1 + $0xe0] sm:$0xff]  ;;  %vm265_vm6 = vcmask 651780   ;;  %vm270_vm7 = vcmask 784005   ;;  %vm275_vm8 = vcmask 916230  }
   0x4   :  { %562 = vmatprep.subr.mxu0 %v53_v2  ;;  %630 = vmatpush3.msra.mxu1 %v70_v6  ;;  %v68_v10 = vld [vmem:[%s1108_s1 + $0x168] sm:$0xff]  ;;  %v35_v11 = vld [vmem:[%s1108_s1 + $0x60] sm:$0xff]  ;;  %v50_v12 = vld [vmem:[%s1108_s1 + $0xd8] sm:$0xff]  ;;  %vm280_vm9 = vcmask 1048455  }
   0x5   :  { %563 = vmatpush3.msra.mxu0 %v37_v4  ;;  %631 = vmatprep.subr.mxu1 %v722_v3  ;;  %v67_v13 = vld [vmem:[%s1108_s1 + $0x160] sm:$0xff]  ;;  %v34_v14 = vld [vmem:[%s1108_s1 + $0x58] sm:$0xff]  ;;  %v49_v15 = vld [vmem:[%s1108_s1 + $0xd0] sm:$0xff] }
   0x6   :  { %564 = vmatprep.subr.mxu0 %v52_v5  ;;  %632 = vmatpush3.msra.mxu1 %v69_v8  ;;  %v66_v16 = vld [vmem:[%s1108_s1 + $0x158] sm:$0xff]  ;;  %v33_v17 = vld [vmem:[%s1108_s1 + $0x50] sm:$0xff]  ;;  %v48_v18 = vld [vmem:[%s1108_s1 + $0xc8] sm:$0xff] }
   0x7   :  { %565 = vmatpush3.msra.mxu0 %v36_v7  ;;  %633 = vmatprep.subr.mxu1 %v722_v3  ;;  %v65_v19 = vld [vmem:[%s1108_s1 + $0x150] sm:$0xff]  ;;  %v32_v20 = vld [vmem:[%s1108_s1 + $0x48] sm:$0xff]  ;;  %v47_v21 = vld [vmem:[%s1108_s1 + $0xc0] sm:$0xff] }
   0x8   :  { %566 = vmatprep.subr.mxu0 %v51_v9  ;;  %634 = vmatpush3.msra.mxu1 %v68_v10  ;;  %v64_v22 = vld [vmem:[%s1108_s1 + $0x148] sm:$0xff]  ;;  %v31_v23 = vld [vmem:[%s1108_s1 + $0x40] sm:$0xff]  ;;  %v46_v24 = vld [vmem:[%s1108_s1 + $0xb8] sm:$0xff] }
   0x9   :  { %567 = vmatpush3.msra.mxu0 %v35_v11  ;;  %635 = vmatprep.subr.mxu1 %v722_v3  ;;  %v63_v25 = vld [vmem:[%s1108_s1 + $0x140] sm:$0xff]  ;;  %v30_v26 = vld [vmem:[%s1108_s1 + $0x38] sm:$0xff]  ;;  %v45_v27 = vld [vmem:[%s1108_s1 + $0xb0] sm:$0xff] }
   0xa   :  { %568 = vmatprep.subr.mxu0 %v50_v12  ;;  %636 = vmatpush3.msra.mxu1 %v67_v13  ;;  %v62_v28 = vld [vmem:[%s1108_s1 + $0x138] sm:$0xff]  ;;  %v29_v29 = vld [vmem:[%s1108_s1 + $0x30] sm:$0xff]  ;;  %v44_v30 = vld [vmem:[%s1108_s1 + $0xa8] sm:$0xff] }
   0xb   :  { %569 = vmatpush3.msra.mxu0 %v34_v14  ;;  %637 = vmatprep.subr.mxu1 %v722_v3  ;;  %v61_v31 = vld [vmem:[%s1108_s1 + $0x130] sm:$0xff]  ;;  %v28_v32 = vld [vmem:[%s1108_s1 + $0x28] sm:$0xff]  ;;  %v43_v33 = vld [vmem:[%s1108_s1 + $0xa0] sm:$0xff] }
   0xc   :  { %570 = vmatprep.subr.mxu0 %v49_v15  ;;  %638 = vmatpush3.msra.mxu1 %v66_v16  ;;  %v60_v34 = vld [vmem:[%s1108_s1 + $0x128] sm:$0xff]  ;;  %v27_v35 = vld [vmem:[%s1108_s1 + $0x20] sm:$0xff]  ;;  %v42_v36 = vld [vmem:[%s1108_s1 + $0x98] sm:$0xff] }
   0xd   :  { %571 = vmatpush3.msra.mxu0 %v33_v17  ;;  %639 = vmatprep.subr.mxu1 %v722_v3  ;;  %v59_v37 = vld [vmem:[%s1108_s1 + $0x120] sm:$0xff]  ;;  %v26_v38 = vld [vmem:[%s1108_s1 + $0x18] sm:$0xff]  ;;  %v41_v39 = vld [vmem:[%s1108_s1 + $0x90] sm:$0xff] }
   0xe   :  { %572 = vmatprep.subr.mxu0 %v48_v18  ;;  %640 = vmatpush3.msra.mxu1 %v65_v19  ;;  %v58_v40 = vld [vmem:[%s1108_s1 + $0x118] sm:$0xff]  ;;  %v25_v41 = vld [vmem:[%s1108_s1 + $0x10] sm:$0xff]  ;;  %v40_v42 = vld [vmem:[%s1108_s1 + $0x88] sm:$0xff] }
   0xf   :  { %573 = vmatpush3.msra.mxu0 %v32_v20  ;;  %641 = vmatprep.subr.mxu1 %v722_v3  ;;  %v21_v43 = vld [vmem:[%s1109_s0 + $0x8] sm:$0xff]  ;;  %v57_v45 = vld [vmem:[%s1108_s1 + $0x110] sm:$0xff]  ;;  %v39_v46 = vld [vmem:[%s1108_s1 + $0x80] sm:$0xff] }
  0x10   :  { %574 = vmatprep.subr.mxu0 %v47_v21  ;;  %642 = vmatpush3.msra.mxu1 %v64_v22  ;;  %v24_v44 = vld [vmem:[%s1108_s1 + $0x8] sm:$0xff]  ;;  %v23_v47 = vld [vmem:[%s1108_s1] sm:$0xff]  ;;  %v22_v51 = vld [vmem:[%s1109_s0 + $0x10] sm:$0xff] }
  0x11   :  { %575 = vmatpush3.msra.mxu0 %v31_v23  ;;  %643 = vmatprep.subr.mxu1 %v722_v3  ;;  %v56_v48 = vld [vmem:[%s1108_s1 + $0x108] sm:$0xff]  ;;  %v20_v49 = vld [vmem:[%s1109_s0] sm:$0xff]  ;;  %v330_v52 = vld [vmem:[%s1110_s3 + $0x170] sm:$0xff] }
  0x12   :  { %576 = vmatprep.subr.mxu0 %v46_v24  ;;  %644 = vmatpush3.msra.mxu1 %v63_v25  ;;  %v55_v50 = vld [vmem:[%s1108_s1 + $0x100] sm:$0xff]  ;;  %v329_v53 = vld [vmem:[%s1110_s3 + $0x168] sm:$0xff]  ;;  %v331_v54 = vld [vmem:[%s1110_s3 + $0x178] sm:$0xff] }
  0x13   :  { %577 = vmatpush3.msra.mxu0 %v30_v26  ;;  %645 = vmatprep.subr.mxu1 %v722_v3  ;;  %v327_v55 = vld [vmem:[%s1110_s3 + $0x158] sm:$0xff]  ;;  %v326_v56 = vld [vmem:[%s1110_s3 + $0x150] sm:$0xff]  ;;  %v328_v57 = vld [vmem:[%s1110_s3 + $0x160] sm:$0xff] }
  0x14   :  { %578 = vmatprep.subr.mxu0 %v45_v27  ;;  %646 = vmatpush3.msra.mxu1 %v62_v28  ;;  %v324_v58 = vld [vmem:[%s1110_s3 + $0x140] sm:$0xff]  ;;  %v325_v59 = vld [vmem:[%s1110_s3 + $0x148] sm:$0xff]  ;;  %v323_v60 = vld [vmem:[%s1110_s3 + $0x138] sm:$0xff] }
  0x15   :  { %579 = vmatpush3.msra.mxu0 %v29_v29  ;;  %647 = vmatprep.subr.mxu1 %v722_v3  ;;  %v321_v61 = vld [vmem:[%s1110_s3 + $0x128] sm:$0xff]  ;;  %v322_v62 = vld [vmem:[%s1110_s3 + $0x130] sm:$0xff]  ;;  %v320_v63 = vld [vmem:[%s1110_s3 + $0x120] sm:$0xff] }
  0x16   :  { %580 = vmatprep.subr.mxu0 %v44_v30  ;;  %648 = vmatpush3.msra.mxu1 %v61_v31  ;;  %v318_v0 = vld [vmem:[%s1110_s3 + $0x110] sm:$0xff]  ;;  %v319_v1 = vld [vmem:[%s1110_s3 + $0x118] sm:$0xff]  ;;  %v317_v2 = vld [vmem:[%s1110_s3 + $0x108] sm:$0xff] }
  0x17   :  { %581 = vmatpush3.msra.mxu0 %v28_v32  ;;  %649 = vmatprep.subr.mxu1 %v722_v3  ;;  %v315_v4 = vld [vmem:[%s1110_s3 + $0xf8] sm:$0xff]  ;;  %v316_v5 = vld [vmem:[%s1110_s3 + $0x100] sm:$0xff]  ;;  %v314_v6 = vld [vmem:[%s1110_s3 + $0xf0] sm:$0xff] }
  0x18   :  { %582 = vmatprep.subr.mxu0 %v43_v33  ;;  %650 = vmatpush3.msra.mxu1 %v60_v34  ;;  %v559_v9 = vld [vmem:[%s1111_s2] ss:$0 sm:$0xff]  ;;  %v311_v32 = vld [vmem:[%s1110_s3 + $0xd8] sm:$0xff]  ;;  %v313_v33 = vld [vmem:[%s1110_s3 + $0xe8] sm:$0xff]  ;;  %s727_s2 = smov 64  }
  0x19   :  { %583 = vmatpush3.msra.mxu0 %v27_v35  ;;  %651 = vmatprep.subr.mxu1 %v722_v3  ;;  %v312_v31 = vld [vmem:[%s1110_s3 + $0xe0] sm:$0xff]  ;;  %v309_v34 = vld [vmem:[%s1110_s3 + $0xc8] sm:$0xff] }
  0x1a   :  { %584 = vmatprep.subr.mxu0 %v42_v36  ;;  %652 = vmatpush3.msra.mxu1 %v59_v37  ;;  %v308_v36 = vld [vmem:[%s1110_s3 + $0xc0] sm:$0xff]  ;;  %v310_v37 = vld [vmem:[%s1110_s3 + $0xd0] sm:$0xff] }
  0x1b   :  { %585 = vmatpush3.msra.mxu0 %v26_v38  ;;  %653 = vmatprep.subr.mxu1 %v722_v3 }
  0x1c   :  { %586 = vmatprep.subr.mxu0 %v41_v39  ;;  %654 = vmatpush3.msra.mxu1 %v58_v40  ;;  %v306_v40 = vld [vmem:[%s1110_s3 + $0xb0] sm:$0xff] }
  0x1d   :  { %587 = vmatpush3.msra.mxu0 %v25_v41  ;;  %655 = vmatprep.subr.mxu1 %v722_v3  ;;  %v305_v41 = vld [vmem:[%s1110_s3 + $0xa8] sm:$0xff] }
  0x1e   :  { %588 = vmatprep.subr.mxu0 %v40_v42  ;;  %142 = vmatprep.mubr.f32.mxu0 %v21_v43  ;;  %v307_v42 = vld [vmem:[%s1110_s3 + $0xb8] sm:$0xff] }
  0x1f   :  { %589 = vmatpush3.msra.mxu0 %v24_v44  ;;  %656 = vmatpush3.msra.mxu1 %v57_v45  ;;  %v303_v44 = vld [vmem:[%s1110_s3 + $0x98] sm:$0xff]  ;;  %v302_v45 = vld [vmem:[%s1110_s3 + $0x90] sm:$0xff] }
  0x20   :  { %590 = vmatprep.subr.mxu0 %v39_v46  ;;  %657 = vmatprep.subr.mxu1 %v722_v3  ;;  %v304_v46 = vld [vmem:[%s1110_s3 + $0xa0] sm:$0xff] }
  0x21   :  { %591 = vmatpush3.msra.mxu0 %v23_v47  ;;  %658 = vmatpush3.msra.mxu1 %v56_v48  ;;  %v724_v47 = vmov 1.0  }
  0x22   :  { %143 = vmatmul.mubr.f32.vlgmr.msra.gmra.mxu0 %v20_v49  ;;  %659 = vmatprep.subr.mxu1 %v722_v3 }
  0x23   :  { %660 = vmatpush3.msra.mxu1 %v55_v50  ;;  %396 = vmatprep.mubr.f32.mxu0 %v722_v3  ;;  %v300_v50 = vld [vmem:[%s1110_s3 + $0x80] sm:$0xff] }
  0x24   :  { %662 = vmatmul.mubr.f32.vlgmr.msra.gmra.mxu1 %v22_v51  ;;  %664 = vmatprep.subr.mxu1 %v722_v3  ;;  %v299_v51 = vld [vmem:[%s1110_s3 + $0x78] sm:$0xff] }
  0x25   :  { %696 = vmatprep.mubr.msk.f32.mxu1 %vm723_vm0, %v722_v3  ;;  %332 = vmatprep.subr.mxu0 %v330_v52  ;;  %v301_v52 = vld [vmem:[%s1110_s3 + $0x88] sm:$0xff] }
  0x26   :  { %665 = vmatpush3.msra.mxu1 %v331_v54  ;;  %333 = vmatpush1.msra.mxu0 %v329_v53  ;;  %v297_v53 = vld [vmem:[%s1110_s3 + $0x68] sm:$0xff] }
  0x27   :  { %666 = vmatprep.subr.mxu1 %v722_v3  ;;  %334 = vmatprep.subr.mxu0 %v327_v55 }
  0x28   :  { %667 = vmatpush3.msra.mxu1 %v328_v57  ;;  %335 = vmatpush1.msra.mxu0 %v326_v56  ;;  %v296_v56 = vld [vmem:[%s1110_s3 + $0x60] sm:$0xff]  ;;  %v298_v57 = vld [vmem:[%s1110_s3 + $0x70] sm:$0xff] }
  0x29   :  { %668 = vmatprep.subr.mxu1 %v722_v3  ;;  %336 = vmatprep.subr.mxu0 %v324_v58 }
  0x2a   :  { %669 = vmatpush3.msra.mxu1 %v325_v59  ;;  %337 = vmatpush1.msra.mxu0 %v323_v60  ;;  %v294_v59 = vld [vmem:[%s1110_s3 + $0x50] sm:$0xff]  ;;  %v293_v60 = vld [vmem:[%s1110_s3 + $0x48] sm:$0xff] }
  0x2b   :  { %670 = vmatprep.subr.mxu1 %v722_v3  ;;  %338 = vmatprep.subr.mxu0 %v321_v61  ;;  %v295_v61 = vld [vmem:[%s1110_s3 + $0x58] sm:$0xff] }
  0x2c   :  { %671 = vmatpush3.msra.mxu1 %v322_v62  ;;  %339 = vmatpush1.msra.mxu0 %v320_v63  ;;  %v291_v62 = vld [vmem:[%s1110_s3 + $0x38] sm:$0xff]  ;;  %v290_v63 = vld [vmem:[%s1110_s3 + $0x30] sm:$0xff] }
  0x2d   :  { %672 = vmatprep.subr.mxu1 %v722_v3  ;;  %340 = vmatprep.subr.mxu0 %v318_v0  ;;  %v292_v0 = vld [vmem:[%s1110_s3 + $0x40] sm:$0xff] }
  0x2e   :  { %673 = vmatpush3.msra.mxu1 %v319_v1  ;;  %341 = vmatpush1.msra.mxu0 %v317_v2  ;;  %v288_v1 = vld [vmem:[%s1110_s3 + $0x20] sm:$0xff]  ;;  %v287_v2 = vld [vmem:[%s1110_s3 + $0x18] sm:$0xff] }
  0x2f   :  { %674 = vmatprep.subr.mxu1 %v722_v3  ;;  %342 = vmatprep.subr.mxu0 %v315_v4  ;;  %v289_v4 = vld [vmem:[%s1110_s3 + $0x28] sm:$0xff] }
  0x30   :  { %675 = vmatpush3.msra.mxu1 %v316_v5  ;;  %343 = vmatpush1.msra.mxu0 %v314_v6  ;;  %v285_v5 = vld [vmem:[%s1110_s3 + $0x8] sm:$0xff]  ;;  %v284_v6 = vld [vmem:[%s1110_s3] sm:$0xff] }
  0x31   :  { %676 = vmatprep.subr.mxu1 %v722_v3  ;;  %344 = vmatprep.subr.mxu0 %v312_v31 }
  0x32   :  { %345 = vmatpush1.msra.mxu0 %v311_v32  ;;  %677 = vmatpush3.msra.mxu1 %v313_v33 }
  0x33   :  { %346 = vmatprep.subr.mxu0 %v309_v34  ;;  %678 = vmatprep.subr.mxu1 %v722_v3 }
  0x34   :  { %347 = vmatpush1.msra.mxu0 %v308_v36  ;;  %679 = vmatpush3.msra.mxu1 %v310_v37 }
  0x35   :  { %348 = vmatprep.subr.mxu0 %v306_v40  ;;  %680 = vmatprep.subr.mxu1 %v722_v3 }
  0x36   :  { %349 = vmatpush1.msra.mxu0 %v305_v41  ;;  %681 = vmatpush3.msra.mxu1 %v307_v42 }
  0x37   :  { %350 = vmatprep.subr.mxu0 %v303_v44  ;;  %682 = vmatprep.subr.mxu1 %v722_v3 }
  0x38   :  { %351 = vmatpush1.msra.mxu0 %v302_v45  ;;  %683 = vmatpush3.msra.mxu1 %v304_v46 }
  0x39   :  { %352 = vmatprep.subr.mxu0 %v300_v50  ;;  %684 = vmatprep.subr.mxu1 %v722_v3 }
  0x3a   :  { %353 = vmatpush1.msra.mxu0 %v299_v51  ;;  %685 = vmatpush3.msra.mxu1 %v301_v52 }
  0x3b   :  { %354 = vmatprep.subr.mxu0 %v297_v53  ;;  %686 = vmatprep.subr.mxu1 %v722_v3 }
  0x3c   :  { %355 = vmatpush1.msra.mxu0 %v296_v56  ;;  %687 = vmatpush3.msra.mxu1 %v298_v57 }
  0x3d   :  { %356 = vmatprep.subr.mxu0 %v294_v59  ;;  %688 = vmatprep.subr.mxu1 %v722_v3 }
  0x3e   :  { %357 = vmatpush1.msra.mxu0 %v293_v60  ;;  %689 = vmatpush3.msra.mxu1 %v295_v61 }
  0x3f   :  { %358 = vmatprep.subr.mxu0 %v291_v62  ;;  %690 = vmatprep.subr.mxu1 %v722_v3 }
  0x40   :  { %359 = vmatpush1.msra.mxu0 %v290_v63  ;;  %691 = vmatpush3.msra.mxu1 %v292_v0 }
  0x41   :  { %360 = vmatprep.subr.mxu0 %v288_v1  ;;  %692 = vmatprep.subr.mxu1 %v722_v3 }
  0x42   :  { %361 = vmatpush1.msra.mxu0 %v287_v2  ;;  %693 = vmatpush3.msra.mxu1 %v289_v4 }
  0x43   :  { %362 = vmatprep.subr.mxu0 %v285_v5  ;;  %694 = vmatprep.subr.mxu1 %v722_v3 }
  0x44   :  { %363 = vmatpush1.msra.mxu0 %v284_v6 }
  0xe2   :  { %v592_v7 = vpop.f32.mrf.mxu0 }
  0xe4   :  { %v593_v8 = vpop.f32.mrf.mxu0  ;;  %v214_v10 = vpop.f32.mrf.mxu1 }
  0xe5   :  { %v594_v11 = vadd.f32 %v593_v8, %v592_v7  ;;  %v286_v7 = vld [vmem:[%s1110_s3 + $0x10] sm:$0xff] }
  0xe6   :  { %v663_v12 = vpop.f32.mrf.mxu1  ;;  %695 = vmatpush3.msra.mxu1 %v286_v7 }
  0xe7   :  { %v145_v13 = vadd.f32 %v594_v11, %v559_v9 }
  0xe9   :  { %v215_v14 = vadd.f32 %v214_v10, %v145_v13 }
  0xeb   :  { %v219_v15 = vmul.f32 0.70710677, %v215_v14  ;;  %v218_v54 = vmul.f32 0.5, %v215_v14 }
  0xed   :  { %v222_v16 = vand.u32 2147483647, %v219_v15  ;;  %vm220_vm1 = vcmp.lt.f32.partialorder %v219_v15, 0.0  ;;  %v732_v15 = vmov 1966171168  }
  0xee   :  { %v221_v48 = vsel %vm220_vm1, -1.0, %v724_v47 }
  0xef   :  { %v223_v17 = vmul.f32 0.3275911, %v222_v16  ;;  %v235_v19 = vsub.f32 0.0, %v222_v16 }
  0xf1   :  { %v224_v18 = vadd.f32 1.0, %v223_v17  ;;  %v236_v20 = vmul.f32 %v235_v19, %v222_v16  ;;  %v478_v16 = vunpack.c.l.s4 %v732_v15  ;;  %v480_v17 = vlaneseq }
  0xf3   :  { %710 = vrcp.f32 %v224_v18  ;;  %v237_v23 = vmul.f32 1.442695, %v236_v20  ;;  %v479_v18 = vunpack.c.0.s8 %v478_v16  ;;  %v481_v19 = vshrl.u32 %v480_v17, 7 }
  0xf4   :  { %vm552_vm10 = vcmp.lt.s32.totalorder %v480_v17, 384 }
  0xf5   :  { %712 = vpow2.f32 %v237_v23 }
 0x100   :  { %v711_v21 = vpop.eup %710 }
 0x101   :  { %v226_v22 = vmul.f32 1.0614054, %v711_v21 }
 0x102   :  { %v713_v38 = vpop.eup %712 }
 0x103   :  { %v227_v24 = vadd.f32 -1.4531521, %v226_v22  ;;  %v482_v22 = vsub.s32 %v479_v18, %v481_v19 }
 0x105   :  { %v228_v25 = vmul.f32 %v711_v21, %v227_v24 }
 0x107   :  { %v229_v26 = vadd.f32 1.4214138, %v228_v25 }
 0x109   :  { %v230_v27 = vmul.f32 %v711_v21, %v229_v26 }
 0x10b   :  { %v231_v28 = vadd.f32 -0.28449672, %v230_v27 }
 0x10d   :  { %v232_v29 = vmul.f32 %v711_v21, %v231_v28 }
 0x10f   :  { %v233_v30 = vadd.f32 0.2548296, %v232_v29  ;;  %v282_v29 = vld [vmem:[%s1112_s4] sm:$0x7] }
 0x111   :  { %v234_v35 = vmul.f32 %v711_v21, %v233_v30 }
 0x113   :  { %v239_v39 = vmul.f32 %v713_v38, %v234_v35 }
 0x115   :  { %v240_v43 = vsub.f32 1.0, %v239_v39 }
 0x117   :  { %v241_v49 = vmul.f32 %v240_v43, %v221_v48 }
 0x119   :  { %v242_v55 = vadd.f32 1.0, %v241_v49 }
 0x11b   :  { %v243_v58 = vmul.f32 %v242_v55, %v218_v54 }
 0x11d   :  { %257 = vrot.lane.b32.xlu1 %v243_v58, %s725_s19  ;;  %247 = vrot.lane.b32.xlu0 %v243_v58, %s726_s20  ;;  %245 = vst.msk [vmem:[#allocation2] sm:$0x1] %vm244_vm2, %v243_v58 }
 0x121   :  { %262 = vrot.lane.b32.xlu1 %v243_v58, %s727_s2  ;;  %252 = vrot.lane.b32.xlu0 %v243_v58, %s728_s29 }
 0x125   :  { %272 = vrot.lane.b32.xlu1 %v243_v58, %s729_s11  ;;  %267 = vrot.lane.b32.xlu0 %v243_v58, %s730_s12 }
 0x129   :  { %277 = vrot.lane.b32.xlu0 %v243_v58, %s731_s13 }
 0x18f   :  { %v258_v8 = vpop.permute.xlu1 %257  ;;  %v248_v9 = vpop.permute.xlu0 %247 }
 0x190   :  { %251 = vst.msk [vmem:[#allocation2 - $0x1] sm:$0x2] %vm250_vm3, %v248_v9 }
 0x193   :  { %v263_v10 = vpop.permute.xlu1 %262  ;;  %v253_v11 = vpop.permute.xlu0 %252 }
 0x194   :  { %256 = vst.msk [vmem:[#allocation2 - $0x2] sm:$0x4] %vm255_vm4, %v253_v11 }
 0x195   :  { %261 = vst.msk [vmem:[#allocation2 - $0x3] sm:$0x8] %vm260_vm5, %v258_v8 }
 0x196   :  { %266 = vst.msk [vmem:[#allocation2 - $0x4] sm:$0x10] %vm265_vm6, %v263_v10 }
 0x197   :  { %v273_v3 = vpop.permute.xlu1 %272  ;;  %v268_v12 = vpop.permute.xlu0 %267 }
 0x198   :  { %271 = vst.msk [vmem:[#allocation2 - $0x5] sm:$0x20] %vm270_vm7, %v268_v12 }
 0x199   :  { %276 = vst.msk [vmem:[#allocation2 - $0x6] sm:$0x40] %vm275_vm8, %v273_v3 }
 0x19b   :  { %v278_v13 = vpop.permute.xlu0 %277 }
 0x19c   :  { %281 = vst.msk [vmem:[#allocation2 - $0x7] sm:$0x80] %vm280_vm9, %v278_v13 }
 0x1a3   :  { %v283_v14 = vld [vmem:[#allocation2] sm:$0x1] }
 0x1a4   :  { %397 = vmatmul.mubr.f32.vlgmr.msra.gmra.mxu0 %v283_v14  ;;  %697 = vmatmul.mubr.f32.vlgmr.msra.gmra.mxu1 %v283_v14 }
 0x264   :  { %v398_v20 = vpop.f32.mrf.mxu0  ;;  %v469_v21 = vpop.f32.mrf.mxu1 }
 0x265   :  { %v490_v26 = vrot.slane %v469_v21, %v482_v22 }
 0x266   :  { %v400_v23 = vpop.f32.mrf.mxu0  ;;  %v698_v24 = vpop.f32.mrf.mxu1 }
 0x267   :  { %v476_v25 = vcombine.low %v398_v20, %v400_v23 }
 0x269   :  { %v483_v27 = vrot.slane %v476_v25, %v482_v22 }
 0x26b   :  { %v491_v28 = vcombine.low %v483_v27, %v490_v26 }
 0x26d   :  { %v498_v30 = vrot.slane %v491_v28, %v482_v22 }
 0x26f   :  { %v500_v31 = vadd.f32 %v498_v30, %v282_v29 }
 0x271   :  { %v502_v32 = vrot.slane %v500_v31, 1  ;;  %v505_v34 = vrot.slane %v500_v31, 2 }
 0x273   :  { %v504_v33 = vmax.f32 %v500_v31, %v502_v32 }
 0x275   :  { %v507_v35 = vmax.f32 %v504_v33, %v505_v34 }
 0x277   :  { %v508_v36 = vsub.f32 %v500_v31, %v507_v35  ;;  %v511_v37 = vsub.f32 %v502_v32, %v507_v35  ;;  %v514_v38 = vsub.f32 %v505_v34, %v507_v35 }
 0x279   :  { %v509_v39 = vmul.f32 1.442695, %v508_v36  ;;  %v512_v40 = vmul.f32 1.442695, %v511_v37  ;;  %v515_v41 = vmul.f32 1.442695, %v514_v38 }
 0x27b   :  { %714 = vpow2.f32 %v509_v39 }
 0x27c   :  { %716 = vpow2.f32 %v512_v40 }
 0x27d   :  { %718 = vpow2.f32 %v515_v41 }
 0x288   :  { %v715_v42 = vpop.eup %714 }
 0x289   :  { %v717_v43 = vpop.eup %716 }
 0x28a   :  { %v517_v44 = vadd.f32 %v717_v43, %v715_v42  ;;  %v719_v45 = vpop.eup %718 }
 0x28c   :  { %v518_v46 = vadd.f32 %v719_v45, %v517_v44 }
 0x28e   :  { %720 = vrcp.f32 %v518_v46 }
 0x29b   :  { %v721_v47 = vpop.eup %720 }
 0x29c   :  { %v520_v48 = vmul.f32 %v721_v47, %v715_v42  ;;  %v521_v49 = vmul.f32 %v721_v47, %v717_v43  ;;  %v522_v50 = vmul.f32 %v721_v47, %v719_v45 }
 0x29e   :  { %v526_v51 = vcombine.low %v520_v48, %v521_v49  ;;  %v540_v53 = vrot.slane %v522_v50, %v482_v22 }
 0x2a0   :  { %v533_v52 = vrot.slane %v526_v51, %v482_v22 }
 0x2a2   :  { %v541_v54 = vcombine.low %v533_v52, %v540_v53 }
 0x2a4   :  { %v548_v55 = vrot.slane %v541_v54, %v482_v22 }
 0x2a6   :  { %554 = vst.msk [vmem:[%s1113_s5] sm:$0x7] %vm552_vm10, %v548_v55 }

</bundles_post_ra>
